<compile_context>
chip_gen: v7x
topology: tpu7x:2x2x1
jax: 0.10.0
libtpu: 0.0.40
codegen_flags: <defaults>
</compile_context>

<pallas_src>
import jax
import jax.numpy as jnp
from jax.experimental import pallas as pl
from jax.experimental.pallas import tpu as pltpu

HIDDEN = 128
LANE = 128


def _round_up(n, m):
    return ((n + m - 1) // m) * m


def qnet_kernel(x_ref, w1_ref, b1_ref, w2_ref, b2_ref, w3_ref, b3_ref, o_ref):
    # layer 1: (bm, S) f32 -> bf16 cast, @ (S, 128) bf16 -> f32 acc, bias+ReLU in f32
    x = x_ref[...].astype(w1_ref.dtype)
    h1 = jnp.dot(x, w1_ref[...], preferred_element_type=jnp.float32)
    h1 = jnp.maximum(h1 + b1_ref[...], 0.0)
    # layer 2: (bm, 128) @ (128, 128) -> f32 acc, bias + ReLU in f32
    h2 = jnp.dot(h1.astype(w2_ref.dtype), w2_ref[...],
                 preferred_element_type=jnp.float32)
    h2 = jnp.maximum(h2 + b2_ref[...], 0.0)
    # layer 3: (bm, 128) @ (128, N_pad) + bias   (no activation)
    o = jnp.dot(h2.astype(w3_ref.dtype), w3_ref[...],
                preferred_element_type=jnp.float32)
    o_ref[...] = o + b3_ref[...]


def pack_params(params, *, compute_dtype=jnp.bfloat16):
    """One-time packing of f32 params (run after init / each optimizer step).

    Weights are (in_features, out_features); y = x @ W + b matches PyTorch
    nn.Linear semantics.  w3/b3 are zero-padded to a lane-dense N so the
    kernel's output stores are full-lane.
    """
    cd = compute_dtype
    S, H = params["w1"].shape
    A = params["w3"].shape[1]
    N_pad = _round_up(max(A, 1), LANE)

    packed = {
        "w1": params["w1"].astype(cd),                                  # (S, H)
        "b1": params["b1"].reshape(1, H).astype(jnp.float32),           # (1, H)
        "w2": params["w2"].astype(cd),                                  # (H, H)
        "b2": params["b2"].reshape(1, H).astype(jnp.float32),           # (1, H)
        "w3": jnp.zeros((H, N_pad), cd).at[:, :A].set(
            params["w3"].astype(cd)),                                   # (H, N_pad)
        "b3": jnp.zeros((1, N_pad), jnp.float32).at[:, :A].set(
            params["b3"].reshape(1, A).astype(jnp.float32)),            # (1, N_pad)
        "action_size": int(A),
        "state_size": int(S),
    }
    return packed


def _choose_bm(B):
    """Batch tile: multiple of 16 (bf16 sublane packing), large enough to
    amortize per-step overhead, and leaving an even grid when possible so
    v7x's two TensorCores both get work."""
    B16 = _round_up(max(B, 1), 16)
    if B16 <= 16:
        bm = B16
    else:
        bm = min(256, _round_up(B16 // 2, 16))
    B_pad = _round_up(B16, bm)
    return bm, B_pad


def qnetwork_forward(x, packed):
    """x: (B, state_size) f32; packed: output of pack_params."""
    B, S = x.shape
    H = HIDDEN
    A = packed["action_size"]
    N_pad = packed["w3"].shape[1]

    bm, B_pad = _choose_bm(B)
    if B_pad != B:
        # batch-only zero pad (rows); no lane/K padding of x is needed.
        x = jnp.pad(x, ((0, B_pad - B), (0, 0)))

    grid = (B_pad // bm,)
    const = lambda i: (0, 0)   # weights/biases stay VMEM-resident across grid

    flops = 2 * B_pad * (S * H + H * H + H * N_pad)
    bytes_accessed = (
        B_pad * S * 4                                     # x (f32)
        + (S * H + H * H + H * N_pad) * 2                 # weights (bf16)
        + (2 * H + N_pad) * 4                             # biases (f32)
        + B_pad * N_pad * 4                               # output (f32)
    )

    out = pl.pallas_call(
        qnet_kernel,
        out_shape=jax.ShapeDtypeStruct((B_pad, N_pad), jnp.float32),
        grid=grid,
        in_specs=[
            pl.BlockSpec((bm, S), lambda i: (i, 0)),      # x: streamed over batch
            pl.BlockSpec((S, H), const),                  # w1 (resident)
            pl.BlockSpec((1, H), const),                  # b1
            pl.BlockSpec((H, H), const),                  # w2
            pl.BlockSpec((1, H), const),                  # b2
            pl.BlockSpec((H, N_pad), const),              # w3
            pl.BlockSpec((1, N_pad), const),              # b3
        ],
        out_specs=pl.BlockSpec((bm, N_pad), lambda i: (i, 0)),
        compiler_params=pltpu.CompilerParams(
            dimension_semantics=("parallel",),            # 2 TCs on v7x
        ),
        cost_estimate=pl.CostEstimate(
            flops=flops, transcendentals=0, bytes_accessed=bytes_accessed),
    )(x, packed["w1"], packed["b1"], packed["w2"], packed["b2"],
      packed["w3"], packed["b3"])

    # Strip batch / lane padding.  (Downstream action-selection can instead
    # consume the padded slab directly to skip this slice.)
    return out[:B, :A]


def init_params(key, state_size, action_size):
    """Deterministic synthetic init (PyTorch-style uniform fan-in bounds)."""
    ks = jax.random.split(key, 6)

    def linear(kw, kb, fan_in, fan_out):
        bound = 1.0 / jnp.sqrt(jnp.float32(fan_in))
        w = jax.random.uniform(kw, (fan_in, fan_out), jnp.float32, -bound, bound)
        b = jax.random.uniform(kb, (1, fan_out), jnp.float32, -bound, bound)
        return w, b

    w1, b1 = linear(ks[0], ks[1], state_size, HIDDEN)
    w2, b2 = linear(ks[2], ks[3], HIDDEN, HIDDEN)
    w3, b3 = linear(ks[4], ks[5], HIDDEN, action_size)
    return {"w1": w1, "b1": b1, "w2": w2, "b2": b2, "w3": w3, "b3": b3}


if __name__ == "__main__":
    key = jax.random.PRNGKey(0)
    k_x, k_p = jax.random.split(key)

    batch = 256          # replay-buffer-sized batch (bm=128 -> grid=(2,))
    state_size = 32      # small, module-consistent input dim
    action_size = 4      # small action space

    x = jax.random.normal(k_x, (batch, state_size), jnp.float32)
    params = init_params(k_p, state_size, action_size)

    packed = pack_params(params)             # one-time packing, not per forward
    out = qnetwork_forward(x, packed)
    jax.block_until_ready(out)

    # reference check in plain JAX (f32); kernel uses bf16 matmuls + f32 acc,
    # so tolerance is relaxed accordingly.
    # TODO(synk): inference-only numerics (bf16 weights); keep f32 weights if
    # this forward ever feeds a TD-loss gradient path.
    h1 = jnp.maximum(x @ params["w1"] + params["b1"], 0.0)
    h2 = jnp.maximum(h1 @ params["w2"] + params["b2"], 0.0)
    ref = h2 @ params["w3"] + params["b3"]
    assert out.shape == (batch, action_size)
    assert jnp.allclose(out, ref, atol=5e-2, rtol=5e-2), float(
        jnp.max(jnp.abs(out - ref)))

    print("KERNEL_OK")
</pallas_src>

<mosaic_0001>
module attributes {stable_mosaic.version = 11 : i64} {
  func.func @qnet_kernel(%arg0: i32, %arg1: memref<128x32xf32, #tpu.memory_space<vmem>>, %arg2: memref<32x128xbf16, #tpu.memory_space<vmem>>, %arg3: memref<1x128xf32, #tpu.memory_space<vmem>>, %arg4: memref<128x128xbf16, #tpu.memory_space<vmem>>, %arg5: memref<1x128xf32, #tpu.memory_space<vmem>>, %arg6: memref<128x128xbf16, #tpu.memory_space<vmem>>, %arg7: memref<1x128xf32, #tpu.memory_space<vmem>>, %arg8: memref<128x128xf32, #tpu.memory_space<vmem>>) attributes {dimension_semantics = [#tpu.dimension_semantics<parallel>], iteration_bounds = array<i64: 2>, scalar_prefetch = 0 : i64, scratch_operands = 0 : i64, tpu.core_type = #tpu.core_type<tc>, window_params = [{transform_indices = @transform_0, window_bounds = array<i64: 128, 32>}, {pipeline_mode = #tpu.pipeline_mode<synchronous>, transform_indices = @transform_1, window_bounds = array<i64: 32, 128>}, {pipeline_mode = #tpu.pipeline_mode<synchronous>, transform_indices = @transform_2, window_bounds = array<i64: 1, 128>}, {pipeline_mode = #tpu.pipeline_mode<synchronous>, transform_indices = @transform_3, window_bounds = array<i64: 128, 128>}, {pipeline_mode = #tpu.pipeline_mode<synchronous>, transform_indices = @transform_4, window_bounds = array<i64: 1, 128>}, {pipeline_mode = #tpu.pipeline_mode<synchronous>, transform_indices = @transform_5, window_bounds = array<i64: 128, 128>}, {pipeline_mode = #tpu.pipeline_mode<synchronous>, transform_indices = @transform_6, window_bounds = array<i64: 1, 128>}, {transform_indices = @transform_7, window_bounds = array<i64: 128, 128>}]} {
    %c0 = arith.constant 0 : index
    %c0_0 = arith.constant 0 : index
    %0 = vector.load %arg1[%c0, %c0_0] : memref<128x32xf32, #tpu.memory_space<vmem>>, vector<128x32xf32>
    %1 = arith.truncf %0 : vector<128x32xf32> to vector<128x32xbf16>
    %c0_1 = arith.constant 0 : index
    %c0_2 = arith.constant 0 : index
    %2 = vector.load %arg2[%c0_1, %c0_2] : memref<32x128xbf16, #tpu.memory_space<vmem>>, vector<32x128xbf16>
    %cst = arith.constant dense<0.000000e+00> : vector<128x128xf32>
    %3 = tpu.matmul %1, %2, %cst {dimension_numbers = #tpu.dot_dimension_numbers<[1], [0], [0], [1], [0, 0, 1, 1], [], []>} : vector<128x32xbf16>, vector<32x128xbf16>, vector<128x128xf32> -> vector<128x128xf32>
    %c0_3 = arith.constant 0 : index
    %c0_4 = arith.constant 0 : index
    %4 = vector.load %arg3[%c0_3, %c0_4] : memref<1x128xf32, #tpu.memory_space<vmem>>, vector<1x128xf32>
    %5 = vector.broadcast %4 : vector<1x128xf32> to vector<128x128xf32>
    %6 = arith.addf %3, %5 : vector<128x128xf32>
    %cst_5 = arith.constant 0.000000e+00 : f32
    %7 = vector.broadcast %cst_5 : f32 to vector<128x128xf32>
    %8 = arith.maximumf %6, %7 : vector<128x128xf32>
    %9 = arith.truncf %8 : vector<128x128xf32> to vector<128x128xbf16>
    %c0_6 = arith.constant 0 : index
    %c0_7 = arith.constant 0 : index
    %10 = vector.load %arg4[%c0_6, %c0_7] : memref<128x128xbf16, #tpu.memory_space<vmem>>, vector<128x128xbf16>
    %cst_8 = arith.constant dense<0.000000e+00> : vector<128x128xf32>
    %11 = tpu.matmul %9, %10, %cst_8 {dimension_numbers = #tpu.dot_dimension_numbers<[1], [0], [0], [1], [0, 0, 1, 1], [], []>} : vector<128x128xbf16>, vector<128x128xbf16>, vector<128x128xf32> -> vector<128x128xf32>
    %c0_9 = arith.constant 0 : index
    %c0_10 = arith.constant 0 : index
    %12 = vector.load %arg5[%c0_9, %c0_10] : memref<1x128xf32, #tpu.memory_space<vmem>>, vector<1x128xf32>
    %13 = vector.broadcast %12 : vector<1x128xf32> to vector<128x128xf32>
    %14 = arith.addf %11, %13 : vector<128x128xf32>
    %cst_11 = arith.constant 0.000000e+00 : f32
    %15 = vector.broadcast %cst_11 : f32 to vector<128x128xf32>
    %16 = arith.maximumf %14, %15 : vector<128x128xf32>
    %17 = arith.truncf %16 : vector<128x128xf32> to vector<128x128xbf16>
    %c0_12 = arith.constant 0 : index
    %c0_13 = arith.constant 0 : index
    %18 = vector.load %arg6[%c0_12, %c0_13] : memref<128x128xbf16, #tpu.memory_space<vmem>>, vector<128x128xbf16>
    %cst_14 = arith.constant dense<0.000000e+00> : vector<128x128xf32>
    %19 = tpu.matmul %17, %18, %cst_14 {dimension_numbers = #tpu.dot_dimension_numbers<[1], [0], [0], [1], [0, 0, 1, 1], [], []>} : vector<128x128xbf16>, vector<128x128xbf16>, vector<128x128xf32> -> vector<128x128xf32>
    %c0_15 = arith.constant 0 : index
    %c0_16 = arith.constant 0 : index
    %20 = vector.load %arg7[%c0_15, %c0_16] : memref<1x128xf32, #tpu.memory_space<vmem>>, vector<1x128xf32>
    %21 = vector.broadcast %20 : vector<1x128xf32> to vector<128x128xf32>
    %22 = arith.addf %19, %21 : vector<128x128xf32>
    %c0_17 = arith.constant 0 : index
    %c0_18 = arith.constant 0 : index
    %23 = vector.load %arg8[%c0_17, %c0_18] : memref<128x128xf32, #tpu.memory_space<vmem>>, vector<128x128xf32>
    tpu.vector_store %arg8[%c0_17, %c0_18], %22 {strides = array<i32>} : memref<128x128xf32, #tpu.memory_space<vmem>>, vector<128x128xf32>,
    return
  }
  func.func @transform_0(%arg0: i32) -> (i32, i32) {
    %c0_i32 = arith.constant 0 : i32
    %c0_i32_0 = arith.constant 0 : i32
    return %arg0, %c0_i32 : i32, i32
  }
  func.func @transform_1(%arg0: i32) -> (i32, i32) {
    %c0_i32 = arith.constant 0 : i32
    %c0_i32_0 = arith.constant 0 : i32
    %c0_i32_1 = arith.constant 0 : i32
    return %c0_i32, %c0_i32_0 : i32, i32
  }
  func.func @transform_2(%arg0: i32) -> (i32, i32) {
    %c0_i32 = arith.constant 0 : i32
    %c0_i32_0 = arith.constant 0 : i32
    %c0_i32_1 = arith.constant 0 : i32
    return %c0_i32, %c0_i32_0 : i32, i32
  }
  func.func @transform_3(%arg0: i32) -> (i32, i32) {
    %c0_i32 = arith.constant 0 : i32
    %c0_i32_0 = arith.constant 0 : i32
    %c0_i32_1 = arith.constant 0 : i32
    return %c0_i32, %c0_i32_0 : i32, i32
  }
  func.func @transform_4(%arg0: i32) -> (i32, i32) {
    %c0_i32 = arith.constant 0 : i32
    %c0_i32_0 = arith.constant 0 : i32
    %c0_i32_1 = arith.constant 0 : i32
    return %c0_i32, %c0_i32_0 : i32, i32
  }
  func.func @transform_5(%arg0: i32) -> (i32, i32) {
    %c0_i32 = arith.constant 0 : i32
    %c0_i32_0 = arith.constant 0 : i32
    %c0_i32_1 = arith.constant 0 : i32
    return %c0_i32, %c0_i32_0 : i32, i32
  }
  func.func @transform_6(%arg0: i32) -> (i32, i32) {
    %c0_i32 = arith.constant 0 : i32
    %c0_i32_0 = arith.constant 0 : i32
    %c0_i32_1 = arith.constant 0 : i32
    return %c0_i32, %c0_i32_0 : i32, i32
  }
  func.func @transform_7(%arg0: i32) -> (i32, i32) {
    %c0_i32 = arith.constant 0 : i32
    %c0_i32_0 = arith.constant 0 : i32
    return %arg0, %c0_i32 : i32, i32
  }
}

</mosaic_0001>

<bundles_post_ra>
// kernel: tpu_custom_call.1
= control target key start
LH: loop header
LB: loop body
LE: loop exit
PB: predicated region body
PF: predicated region fallthrough
CT: control target
= control target key end

     0   :  { %12 = vsyncpa [#allocation3], 0  ;;  %s1474_s0 = inlined_call_operand.vmem [shape: f32[256,32], index: 0, kind: input, shape index: {}]   ;;  %s1475_s1 = inlined_call_operand.vmem [shape: bf16[32,128], index: 1, kind: input, shape index: {}]   ;;  %s1476_s2 = inlined_call_operand.vmem [shape: f32[1,128], index: 2, kind: input, shape index: {}]   ;;  %s1477_s3 = inlined_call_operand.vmem [shape: bf16[128,128], index: 3, kind: input, shape index: {}]   ;;  %s1478_s4 = inlined_call_operand.vmem [shape: f32[1,128], index: 4, kind: input, shape index: {}]   ;;  %s1479_s5 = inlined_call_operand.vmem [shape: bf16[128,128], index: 5, kind: input, shape index: {}]   ;;  %s1480_s6 = inlined_call_operand.vmem [shape: f32[1,128], index: 6, kind: input, shape index: {}]   ;;  %s1481_s7 = inlined_call_operand.hbm [shape: f32[256,128], index: 7, kind: output, shape index: {}]  }
   0x1   :  { %14 = vsyncpa [#allocation3 + $0x1], 0  ;;  %s1260_s24 = smov 0   ;;  %s1262_s25 = smov 0  }
   0x2   :  { %s1264_s26 = smov 0   ;;  %s1266_s27 = smov 0  }
   0x3 LB: > { %s1281_s28 = sadd.s32 4294967295, %s1215_s27   ;;  %s926_s29 = sadd.s32 4294967294, %s1215_s27   ;;  %s1215_s27 = sphi %s1266_s27, %s1487_s27   ;;  %s1211_s26 = sphi %s1264_s26, %s1486_s26   ;;  %s1207_s25 = sphi %s1262_s25, %s1485_s25   ;;  %s1203_s24 = sphi %s1260_s24, %s1484_s24  }
   0x4   : > { %s1285_s30 = sadd.s32 1, %s1215_s27   ;;  %s179_s8 = sadd.s32 1, %s1211_s26 }
   0x5   : > { %s176_s9 = ssub.s32 %s1215_s27, %s1285_s30  ;;  %p189_p0 = scmp.ne.s32.totalorder %s1211_s26, %s1207_s25 }
   0x6   : > { %p177_p1 = scmp.eq.s32.totalorder %s176_s9, 0  ;;  %p190_p2 = scmp.eq.s32.totalorder %s1281_s28, 1 }
   0x7   : > { %p195_p3 = scmp.ne.s32.totalorder %s1207_s25, %s1203_s24  ;;  %p196_p4 = scmp.eq.s32.totalorder %s926_s29, 1 }
   0x8   : > { %s1296_s10 = scalar_select %p177_p1, %s1211_s26, %s179_s8  }
   0x9   : > { %p1298_p5 = por %p190_p2, %p189_p0  ;;  %p1302_p6 = por %p196_p4, %p195_p3 }
   0xa   : > { %p929_p7 = scmp.ge.s32.totalorder %s1215_s27, 1  ;;  %p241_p8 = scmp.lt.s32.totalorder %s1215_s27, 3 }
   0xc   : > { %p242_p9 = pnand %p929_p7, %p241_p8 }
   0xd   : > { %v1135_v0 = vld [vmem:[%s1475_s1] sm:$0xff] (!%p242_p9)   ;;  %s931_s15 = sshll.u32 (!%p242_p9), %s1281_s28, 4  ;;  %v1136_v1 = vld [vmem:[%s1475_s1 + $0x8] sm:$0xff] (!%p242_p9)   ;;  %v1139_v4 = vld [vmem:[%s1477_s3 + $0x10] sm:$0xff] (!%p242_p9)   ;;  %vm328_vm0 = vcmask (!%p242_p9), 261120   ;;  %s270_s16 = sand.u32 (!%p242_p9), 1, %s1207_s25  }
   0xe   : > { %245 = sbr.rel (%p242_p9) target bundleno = 728 (0x2d8), region = 48  ;;  %p274_p10 = scmp.lt.s32.totalorder (!%p242_p9), %s931_s15, 31  ;;  %1010 = vmatprep.subr.bf16.mxu0 (!%p242_p9), %v1135_v0  ;;  %v1137_v2 = vld [vmem:[%s1477_s3] sm:$0xff] (!%p242_p9)   ;;  %v1138_v3 = vld [vmem:[%s1477_s3 + $0x8] sm:$0xff] (!%p242_p9)   ;;  %v1140_v14 = vld [vmem:[%s1477_s3 + $0x18] sm:$0xff] (!%p242_p9)  }
   0xf   : > { %1011 = vmatpush3.bf16.msra.mxu0 (!%p242_p9), %v1135_v0  ;;  %1030 = vmatprep.subr.bf16.mxu1 (!%p242_p9), %v1137_v2  ;;  %v1141_v18 = vld [vmem:[%s1477_s3 + $0x20] sm:$0xff] (!%p242_p9)   ;;  %v1142_v22 = vld [vmem:[%s1477_s3 + $0x28] sm:$0xff] (!%p242_p9)   ;;  %v1143_v32 = vld [vmem:[%s1477_s3 + $0x30] sm:$0xff] (!%p242_p9)   ;;  %s930_s17 = sshll.u32 (!%p242_p9), %s270_s16, 7  ;;  %s967_s21 = sshll.u32 (!%p242_p9), %s1281_s28, 11 }
  0x10   : > { %1012 = vmatprep.subr.bf16.mxu0 (!%p242_p9), %v1136_v1  ;;  %1031 = vmatpush3.bf16.msra.mxu1 (!%p242_p9), %v1137_v2  ;;  %v1144_v33 = vld [vmem:[%s1477_s3 + $0x38] sm:$0xff] (!%p242_p9)   ;;  %v1145_v34 = vld [vmem:[%s1479_s5] sm:$0xff] (!%p242_p9)   ;;  %v1146_v35 = vld [vmem:[%s1479_s5 + $0x8] sm:$0xff] (!%p242_p9)   ;;  %s1404_s20 = scalar_lea.vmem (!%p242_p9), [#allocation2], %s930_s17  ;;  %s1424_s9 = scalar_lea.hbm (!%p242_p9), %s1481_s7, %s967_s21 }
  0x11   : > { %1032 = vmatprep.subr.bf16.mxu1 (!%p242_p9), %v1138_v3  ;;  %v1147_v36 = vld [vmem:[%s1479_s5 + $0x10] sm:$0xff] (!%p242_p9)   ;;  %v1148_v37 = vld [vmem:[%s1479_s5 + $0x18] sm:$0xff] (!%p242_p9)   ;;  %v1149_v38 = vld [vmem:[%s1479_s5 + $0x20] sm:$0xff] (!%p242_p9)   ;;  %s1433_s28 = scalar_lea.sflag (!%p242_p9), [#allocation3], %s270_s16  ;;  %s1217_s13 = smov (!%p242_p9), [#allocation2]  }
  0x12   : > { %v1150_v39 = vld [vmem:[%s1479_s5 + $0x28] sm:$0xff] (!%p242_p9)   ;;  %v933_v40 = vld [vmem:[%s1476_s2] ss:$0 sm:$0xff] (!%p242_p9)  ;;  %s1157_s14 = sshll.u32 (!%p242_p9), %s1217_s13, 4  ;;  %s1158_s14 = int_to_ptr.vmem [resolvable:$false] %s1157_s14 }
  0x13   : > { %1013 = vmatpush3.bf16.msra.mxu0 (!%p242_p9), %v1136_v1 }
  0x14   : > { %1033 = vmatpush3.bf16.msra.mxu1 (!%p242_p9), %v1138_v3  ;;  %1062 = vmatprep.subr.bf16.mxu0 (!%p242_p9), %v1145_v34 }
  0x15   : > { %s1489_s15 = smov (!%p274_p10, %s931_s15), 31  ;;  %1034 = vmatprep.subr.bf16.mxu1 %v1139_v4 }
  0x16   : > { %s932_s22 = sshll.u32 %s1489_s15, 3  ;;  %s1159_s15 = scalar_lea.vmem %s1158_s14, 4096 }
  0x17   : > { %s1324_s8 = scalar_lea.vmem %s1474_s0, %s932_s22  ;;  %s864_s22 = sshll.u32 %s1404_s20, 4  ;;  %s1426_s22 = int_to_ptr.vmem [resolvable:$true] %s864_s22 }
  0x18   : > { %v281_v5 = vld [vmem:[%s1324_s8] sm:$0xff]  ;;  %v282_v6 = vld [vmem:[%s1324_s8 + $0x8] sm:$0xff]  ;;  %v283_v7 = vld [vmem:[%s1324_s8 + $0x10] sm:$0xff]  ;;  %1035 = vmatpush3.bf16.msra.mxu1 %v1139_v4  ;;  %p1160_p0 = scmp.lt.s32.totalorder %s1426_s22, %s1158_s14 }
  0x19   : > { %v297_v8 = vpack.c.bf16 %v282_v6, %v281_v5  ;;  %v284_v9 = vld [vmem:[%s1324_s8 + $0x18] sm:$0xff]  ;;  %v285_v10 = vld [vmem:[%s1324_s8 + $0x20] sm:$0xff]  ;;  %v286_v11 = vld [vmem:[%s1324_s8 + $0x28] sm:$0xff]  ;;  %1036 = vmatprep.subr.bf16.mxu1 %v1140_v14 }
  0x1a   : > { %v298_v12 = vpack.c.bf16 %v284_v9, %v283_v7  ;;  %v299_v13 = vpack.c.bf16 %v286_v11, %v285_v10  ;;  %v287_v15 = vld [vmem:[%s1324_s8 + $0x30] sm:$0xff]  ;;  %v288_v16 = vld [vmem:[%s1324_s8 + $0x38] sm:$0xff]  ;;  %v289_v17 = vld [vmem:[%s1324_s8 + $0x40] sm:$0xff] }
  0x1b   : > { %1014 = vmatprep.mubr.msk.bf16.mxu0 %vm328_vm0, %v297_v8  ;;  %v290_v19 = vld [vmem:[%s1324_s8 + $0x48] sm:$0xff]  ;;  %v300_v20 = vpack.c.bf16 %v288_v16, %v287_v15  ;;  %v291_v23 = vld [vmem:[%s1324_s8 + $0x50] sm:$0xff]  ;;  %v292_v24 = vld [vmem:[%s1324_s8 + $0x58] sm:$0xff] }
  0x1c   : > { %1015 = vmatmul.mubr.msk.bf16.vlgmr.msra.gmra.mrb[0].mxu0 %vm328_vm0, %v298_v12  ;;  %v301_v21 = vpack.c.bf16 %v290_v19, %v289_v17  ;;  %1037 = vmatpush3.bf16.msra.mxu1 %v1140_v14  ;;  %v293_v25 = vld [vmem:[%s1324_s8 + $0x60] sm:$0xff]  ;;  %v294_v26 = vld [vmem:[%s1324_s8 + $0x68] sm:$0xff]  ;;  %v302_v27 = vpack.c.bf16 %v292_v24, %v291_v23  ;;  %v295_v29 = vld [vmem:[%s1324_s8 + $0x70] sm:$0xff] }
  0x1d   : > { %1018 = vmatprep.mubr.msk.bf16.mxu0 %vm328_vm0, %v299_v13  ;;  %1038 = vmatprep.subr.bf16.mxu1 %v1141_v18  ;;  %v303_v28 = vpack.c.bf16 %v294_v26, %v293_v25  ;;  %v296_v30 = vld [vmem:[%s1324_s8 + $0x78] sm:$0xff]  ;;  %s1153_s8 = scalar_lea.vmem %s1426_s22, 2048 }
  0x1e   : > { %v304_v31 = vpack.c.bf16 %v296_v30, %v295_v29  ;;  %1063 = vmatpush3.bf16.msra.mxu0 %v1145_v34  ;;  %v1152_v34 = vld [vmem:[%s1479_s5 + $0x38] sm:$0xff]   ;;  %p1154_p11 = scmp.ne.s32.totalorder %s1426_s22, %s1153_s8  ;;  %p1161_p1 = scmp.lt.s32.totalorder %s1159_s15, %s1153_s8 }
  0x1f   : > { %1064 = vmatprep.subr.bf16.mxu0 %v1146_v35 }
  0x20   : > { %1039 = vmatpush3.bf16.msra.mxu1 %v1141_v18  ;;  %p1155_p12 = pnand %p1154_p11, %p1298_p5  ;;  %p1162_p2 = por %p1161_p1, %p1160_p0 }
  0x21   : > { %1040 = vmatprep.subr.bf16.mxu1 %v1142_v22 }
  0x22   : > { %1065 = vmatpush3.bf16.msra.mxu0 %v1146_v35  ;;  %v944_v35 = vld [vmem:[%s1478_s4] ss:$0 sm:$0xff]  ;;  %p1156_p13 = pneg %p1155_p12 }
  0x23   : > { %1066 = vmatprep.subr.bf16.mxu0 %v1147_v36 }
  0x24   : > { %1019 = vmatmul.mubr.msk.bf16.gmra.mrb[4].mxu0 %vm328_vm0, %v300_v20  ;;  %1041 = vmatpush3.bf16.msra.mxu1 %v1142_v22  ;;  %p1163_p3 = pnand %p1162_p2, %p1156_p13 }
  0x25   : > { %1022 = vmatprep.mubr.msk.bf16.mxu0 %vm328_vm0, %v301_v21  ;;  %1042 = vmatprep.subr.bf16.mxu1 %v1143_v32 }
  0x26   : > { %1067 = vmatpush3.bf16.msra.mxu0 %v1147_v36 }
  0x27   : > { %1068 = vmatprep.subr.bf16.mxu0 %v1148_v37 }
  0x28   : > { %1043 = vmatpush3.bf16.msra.mxu1 %v1143_v32 }
  0x29   : > { %1044 = vmatprep.subr.bf16.mxu1 %v1144_v33 }
  0x2a   : > { %1069 = vmatpush3.bf16.msra.mxu0 %v1148_v37 }
  0x2b   : > { %1070 = vmatprep.subr.bf16.mxu0 %v1149_v38 }
  0x2c   : > { %1023 = vmatmul.mubr.msk.bf16.gmra.mrb[8].mxu0 %vm328_vm0, %v302_v27  ;;  %1045 = vmatpush3.bf16.msra.mxu1 %v1144_v33  ;;  %v1151_v33 = vld [vmem:[%s1479_s5 + $0x30] sm:$0xff]  }
  0x2d   : > { %1026 = vmatprep.mubr.msk.bf16.mxu0 %vm328_vm0, %v303_v28 }
  0x2e   : > { %1071 = vmatpush3.bf16.msra.mxu0 %v1149_v38 }
  0x2f   : > { %1072 = vmatprep.subr.bf16.mxu0 %v1150_v39 }
  0x32   : > { %1073 = vmatpush3.bf16.msra.mxu0 %v1150_v39 }
  0x33   : > { %1074 = vmatprep.subr.bf16.mxu0 %v1151_v33 }
  0x34   : > { %1027 = vmatmul.mubr.msk.bf16.gmra.mrb[12].mxu0 %vm328_vm0, %v304_v31 }
  0x36   : > { %1075 = vmatpush3.bf16.msra.mxu0 %v1151_v33 }
  0x37   : > { %1076 = vmatprep.subr.bf16.mxu0 %v1152_v34 }
  0x3a   : > { %1077 = vmatpush3.bf16.msra.mxu0 %v1152_v34 }
  0xef   : > { %v1016_v41 = vpop.f32.mrb[0].mxu0 }
  0xf0   : > { %v396_v42 = vadd.f32 %v1016_v41, %v933_v40  ;;  %v387_v43 = vpop.f32.mrb[1].mxu0 }
  0xf1   : > { %v388_v44 = vadd.f32 %v933_v40, %v387_v43  ;;  %v1017_v45 = vpop.f32.mrb[2].mxu0 }
  0xf2   : > { %v399_v46 = vadd.f32 %v1017_v45, %v933_v40  ;;  %v390_v47 = vpop.f32.mrb[3].mxu0  ;;  %v452_v49 = vmax.f32 %v396_v42, 0.0 }
  0xf3   : > { %v391_v48 = vadd.f32 %v933_v40, %v390_v47  ;;  %v450_v51 = vmax.f32 %v388_v44, 0.0 }
  0xf4   : > { %v453_v50 = vmax.f32 %v399_v46, 0.0 }
  0xf5   : > { %v451_v52 = vmax.f32 %v391_v48, 0.0 }
  0xf6   : > { %v467_v53 = vpack.c.bf16 %v453_v50, %v452_v49 }
  0xf7   : > { %v1020_v54 = vpop.f32.mrb[4].mxu0  ;;  %v466_v55 = vpack.c.bf16 %v451_v52, %v450_v51 }
  0xf8   : > { %v412_v56 = vadd.f32 %v1020_v54, %v933_v40  ;;  %v403_v57 = vpop.f32.mrb[5].mxu0 }
  0xf9   : > { %v404_v58 = vadd.f32 %v933_v40, %v403_v57  ;;  %v1021_v59 = vpop.f32.mrb[6].mxu0  ;;  %1046 = vmatprep.mubr.bf16.mxu1 %v466_v55 }
  0xfa   : > { %v415_v60 = vadd.f32 %v1021_v59, %v933_v40  ;;  %v406_v61 = vpop.f32.mrb[7].mxu0  ;;  %1047 = vmatmul.mubr.bf16.vlgmr.msra.gmra.mrb[0].mxu1 %v467_v53  ;;  %v456_v63 = vmax.f32 %v412_v56, 0.0 }
  0xfb   : > { %v407_v62 = vadd.f32 %v933_v40, %v406_v61  ;;  %v454_v1 = vmax.f32 %v404_v58, 0.0 }
  0xfc   : > { %v457_v0 = vmax.f32 %v415_v60, 0.0 }
  0xfd   : > { %v455_v2 = vmax.f32 %v407_v62, 0.0 }
  0xfe   : > { %v469_v3 = vpack.c.bf16 %v457_v0, %v456_v63 }
  0xff   : > { %v468_v4 = vpack.c.bf16 %v455_v2, %v454_v1  ;;  %v1024_v5 = vpop.f32.mrb[8].mxu0 }
 0x100   : > { %v428_v6 = vadd.f32 %v1024_v5, %v933_v40  ;;  %v419_v7 = vpop.f32.mrb[9].mxu0 }
 0x101   : > { %v420_v8 = vadd.f32 %v933_v40, %v419_v7  ;;  %v1025_v9 = vpop.f32.mrb[10].mxu0  ;;  %1050 = vmatprep.mubr.bf16.mxu1 %v468_v4 }
 0x102   : > { %v431_v10 = vadd.f32 %v1025_v9, %v933_v40  ;;  %v422_v11 = vpop.f32.mrb[11].mxu0  ;;  %1051 = vmatmul.mubr.bf16.gmra.mrb[4].mxu1 %v469_v3  ;;  %v460_v13 = vmax.f32 %v428_v6, 0.0 }
 0x103   : > { %v423_v12 = vadd.f32 %v933_v40, %v422_v11  ;;  %v458_v15 = vmax.f32 %v420_v8, 0.0 }
 0x104   : > { %v461_v14 = vmax.f32 %v431_v10, 0.0 }
 0x105   : > { %v459_v16 = vmax.f32 %v423_v12, 0.0 }
 0x106   : > { %v471_v17 = vpack.c.bf16 %v461_v14, %v460_v13 }
 0x107   : > { %v470_v18 = vpack.c.bf16 %v459_v16, %v458_v15  ;;  %v1028_v19 = vpop.f32.mrb[12].mxu0 }
 0x108   : > { %v444_v20 = vadd.f32 %v1028_v19, %v933_v40  ;;  %v435_v21 = vpop.f32.mrb[13].mxu0 }
 0x109   : > { %v436_v22 = vadd.f32 %v933_v40, %v435_v21  ;;  %v1029_v23 = vpop.f32.mrb[14].mxu0  ;;  %1054 = vmatprep.mubr.bf16.mxu1 %v470_v18 }
 0x10a   : > { %v447_v24 = vadd.f32 %v1029_v23, %v933_v40  ;;  %v438_v25 = vpop.f32.mrb[15].mxu0  ;;  %1055 = vmatmul.mubr.bf16.gmra.mrb[8].mxu1 %v471_v17  ;;  %v464_v27 = vmax.f32 %v444_v20, 0.0 }
 0x10b   : > { %v439_v26 = vadd.f32 %v933_v40, %v438_v25  ;;  %v462_v29 = vmax.f32 %v436_v22, 0.0 }
 0x10c   : > { %v465_v28 = vmax.f32 %v447_v24, 0.0 }
 0x10d   : > { %v463_v30 = vmax.f32 %v439_v26, 0.0 }
 0x10e   : > { %v473_v31 = vpack.c.bf16 %v465_v28, %v464_v27  ;;  %v953_v28 = vld [vmem:[%s1480_s6] ss:$0 sm:$0xff] }
 0x10f   : > { %v472_v32 = vpack.c.bf16 %v463_v30, %v462_v29 }
 0x111   : > { %1058 = vmatprep.mubr.bf16.mxu1 %v472_v32 }
 0x112   : > { %1059 = vmatmul.mubr.bf16.gmra.mrb[12].mxu1 %v473_v31 }
 0x1cd   : > { %v1048_v36 = vpop.f32.mrb[0].mxu1 }
 0x1ce   : > { %v588_v37 = vadd.f32 %v1048_v36, %v944_v35  ;;  %v579_v38 = vpop.f32.mrb[1].mxu1 }
 0x1cf   : > { %v580_v39 = vadd.f32 %v944_v35, %v579_v38  ;;  %v1049_v40 = vpop.f32.mrb[2].mxu1 }
 0x1d0   : > { %v591_v41 = vadd.f32 %v1049_v40, %v944_v35  ;;  %v582_v42 = vpop.f32.mrb[3].mxu1  ;;  %v644_v44 = vmax.f32 %v588_v37, 0.0 }
 0x1d1   : > { %v583_v43 = vadd.f32 %v944_v35, %v582_v42  ;;  %v642_v46 = vmax.f32 %v580_v39, 0.0 }
 0x1d2   : > { %v645_v45 = vmax.f32 %v591_v41, 0.0 }
 0x1d3   : > { %v643_v47 = vmax.f32 %v583_v43, 0.0 }
 0x1d4   : > { %v659_v48 = vpack.c.bf16 %v645_v45, %v644_v44 }
 0x1d5   : > { %v658_v49 = vpack.c.bf16 %v643_v47, %v642_v46  ;;  %v1052_v50 = vpop.f32.mrb[4].mxu1 }
 0x1d6   : > { %v604_v51 = vadd.f32 %v1052_v50, %v944_v35  ;;  %v595_v52 = vpop.f32.mrb[5].mxu1 }
 0x1d7   : > { %v596_v53 = vadd.f32 %v944_v35, %v595_v52  ;;  %v1053_v54 = vpop.f32.mrb[6].mxu1  ;;  %1078 = vmatprep.mubr.bf16.mxu0 %v658_v49 }
 0x1d8   : > { %v607_v55 = vadd.f32 %v1053_v54, %v944_v35  ;;  %v598_v56 = vpop.f32.mrb[7].mxu1  ;;  %1079 = vmatmul.mubr.bf16.vlgmr.msra.gmra.mrb[16].mxu0 %v659_v48  ;;  %v648_v58 = vmax.f32 %v604_v51, 0.0 }
 0x1d9   : > { %v599_v57 = vadd.f32 %v944_v35, %v598_v56  ;;  %v646_v60 = vmax.f32 %v596_v53, 0.0 }
 0x1da   : > { %v649_v59 = vmax.f32 %v607_v55, 0.0 }
 0x1db   : > { %v647_v61 = vmax.f32 %v599_v57, 0.0 }
 0x1dc   : > { %v661_v62 = vpack.c.bf16 %v649_v59, %v648_v58 }
 0x1dd   : > { %v660_v63 = vpack.c.bf16 %v647_v61, %v646_v60  ;;  %v1056_v0 = vpop.f32.mrb[8].mxu1 }
 0x1de   : > { %v620_v1 = vadd.f32 %v1056_v0, %v944_v35  ;;  %v611_v2 = vpop.f32.mrb[9].mxu1 }
 0x1df   : > { %v612_v3 = vadd.f32 %v944_v35, %v611_v2  ;;  %v1057_v4 = vpop.f32.mrb[10].mxu1  ;;  %1082 = vmatprep.mubr.bf16.mxu0 %v660_v63 }
 0x1e0   : > { %v623_v5 = vadd.f32 %v1057_v4, %v944_v35  ;;  %v614_v6 = vpop.f32.mrb[11].mxu1  ;;  %1083 = vmatmul.mubr.bf16.gmra.mrb[20].mxu0 %v661_v62  ;;  %v652_v8 = vmax.f32 %v620_v1, 0.0 }
 0x1e1   : > { %v615_v7 = vadd.f32 %v944_v35, %v614_v6  ;;  %v650_v10 = vmax.f32 %v612_v3, 0.0 }
 0x1e2   : > { %v653_v9 = vmax.f32 %v623_v5, 0.0 }
 0x1e3   : > { %v651_v11 = vmax.f32 %v615_v7, 0.0 }
 0x1e4   : > { %v663_v12 = vpack.c.bf16 %v653_v9, %v652_v8 }
 0x1e5   : > { %v662_v13 = vpack.c.bf16 %v651_v11, %v650_v10  ;;  %v1060_v14 = vpop.f32.mrb[12].mxu1 }
 0x1e6   : > { %v636_v15 = vadd.f32 %v1060_v14, %v944_v35  ;;  %v627_v16 = vpop.f32.mrb[13].mxu1 }
 0x1e7   : > { %v628_v17 = vadd.f32 %v944_v35, %v627_v16  ;;  %v1061_v18 = vpop.f32.mrb[14].mxu1  ;;  %1086 = vmatprep.mubr.bf16.mxu0 %v662_v13 }
 0x1e8   : > { %v639_v19 = vadd.f32 %v1061_v18, %v944_v35  ;;  %v630_v20 = vpop.f32.mrb[15].mxu1  ;;  %1087 = vmatmul.mubr.bf16.gmra.mrb[24].mxu0 %v663_v12  ;;  %v656_v22 = vmax.f32 %v636_v15, 0.0 }
 0x1e9   : > { %v631_v21 = vadd.f32 %v944_v35, %v630_v20  ;;  %v654_v24 = vmax.f32 %v628_v17, 0.0 }
 0x1ea   : > { %v657_v23 = vmax.f32 %v639_v19, 0.0 }
 0x1eb   : > { %v655_v25 = vmax.f32 %v631_v21, 0.0 }
 0x1ec   : > { %v665_v26 = vpack.c.bf16 %v657_v23, %v656_v22 }
 0x1ed   : > { %v664_v27 = vpack.c.bf16 %v655_v25, %v654_v24 }
 0x1ef   : > { %1090 = vmatprep.mubr.bf16.mxu0 %v664_v27 }
 0x1f0   : > { %1091 = vmatmul.mubr.bf16.gmra.mrb[28].mxu0 %v665_v26 }
 0x2ab   : > { %v1080_v29 = vpop.f32.mrb[16].mxu0 }
 0x2ac   : > { %v780_v30 = vadd.f32 %v1080_v29, %v953_v28  ;;  %v771_v31 = vpop.f32.mrb[17].mxu0 }
 0x2ad   : > { %v772_v32 = vadd.f32 %v953_v28, %v771_v31  ;;  %v1081_v33 = vpop.f32.mrb[18].mxu0 }
 0x2ae   : > { %836 = vst [vmem:[%s1404_s20 + $0x10] sm:$0xff] %v780_v30  ;;  %v783_v34 = vadd.f32 %v1081_v33, %v953_v28  ;;  %v774_v35 = vpop.f32.mrb[19].mxu0 }
 0x2af   : > { %834 = vst [vmem:[%s1404_s20] sm:$0xff] %v772_v32  ;;  %v775_v36 = vadd.f32 %v953_v28, %v774_v35 }
 0x2b0   : > { %837 = vst [vmem:[%s1404_s20 + $0x18] sm:$0xff] %v783_v34 }
 0x2b1   : > { %835 = vst [vmem:[%s1404_s20 + $0x8] sm:$0xff] %v775_v36 }
 0x2b3   : > { %v1084_v37 = vpop.f32.mrb[20].mxu0 }
 0x2b4   : > { %v796_v38 = vadd.f32 %v1084_v37, %v953_v28  ;;  %v787_v39 = vpop.f32.mrb[21].mxu0 }
 0x2b5   : > { %v788_v40 = vadd.f32 %v953_v28, %v787_v39  ;;  %v1085_v41 = vpop.f32.mrb[22].mxu0 }
 0x2b6   : > { %840 = vst [vmem:[%s1404_s20 + $0x30] sm:$0xff] %v796_v38  ;;  %v799_v42 = vadd.f32 %v1085_v41, %v953_v28  ;;  %v790_v43 = vpop.f32.mrb[23].mxu0 }
 0x2b7   : > { %838 = vst [vmem:[%s1404_s20 + $0x20] sm:$0xff] %v788_v40  ;;  %v791_v44 = vadd.f32 %v953_v28, %v790_v43 }
 0x2b8   : > { %841 = vst [vmem:[%s1404_s20 + $0x38] sm:$0xff] %v799_v42 }
 0x2b9   : > { %839 = vst [vmem:[%s1404_s20 + $0x28] sm:$0xff] %v791_v44 }
 0x2bb   : > { %v1088_v45 = vpop.f32.mrb[24].mxu0 }
 0x2bc   : > { %v812_v46 = vadd.f32 %v1088_v45, %v953_v28  ;;  %v803_v47 = vpop.f32.mrb[25].mxu0 }
 0x2bd   : > { %v804_v48 = vadd.f32 %v953_v28, %v803_v47  ;;  %v1089_v49 = vpop.f32.mrb[26].mxu0 }
 0x2be   : > { %844 = vst [vmem:[%s1404_s20 + $0x50] sm:$0xff] %v812_v46  ;;  %v815_v50 = vadd.f32 %v1089_v49, %v953_v28  ;;  %v806_v51 = vpop.f32.mrb[27].mxu0 }
 0x2bf   : > { %842 = vst [vmem:[%s1404_s20 + $0x40] sm:$0xff] %v804_v48  ;;  %v807_v52 = vadd.f32 %v953_v28, %v806_v51 }
 0x2c0   : > { %845 = vst [vmem:[%s1404_s20 + $0x58] sm:$0xff] %v815_v50 }
 0x2c1   : > { %843 = vst [vmem:[%s1404_s20 + $0x48] sm:$0xff] %v807_v52 }
 0x2c3   : > { %v1092_v53 = vpop.f32.mrb[28].mxu0 }
 0x2c4   : > { %v828_v54 = vadd.f32 %v1092_v53, %v953_v28  ;;  %v819_v55 = vpop.f32.mrb[29].mxu0 }
 0x2c5   : > { %v820_v56 = vadd.f32 %v953_v28, %v819_v55  ;;  %v1093_v57 = vpop.f32.mrb[30].mxu0 }
 0x2c6   : > { %848 = vst [vmem:[%s1404_s20 + $0x70] sm:$0xff] %v828_v54  ;;  %v831_v58 = vadd.f32 %v1093_v57, %v953_v28  ;;  %v822_v59 = vpop.f32.mrb[31].mxu0 }
 0x2c7   : > { %846 = vst [vmem:[%s1404_s20 + $0x60] sm:$0xff] %v820_v56  ;;  %v823_v60 = vadd.f32 %v953_v28, %v822_v59 }
 0x2c8   : > { %849 = vst [vmem:[%s1404_s20 + $0x78] sm:$0xff] %v831_v58 }
 0x2c9   : > { %847 = vst [vmem:[%s1404_s20 + $0x68] sm:$0xff] %v823_v60 }
 0x2ca   : > { %1166 = shalt.err (!%p1163_p3)
}
 0x2cb   : > { %s1167_s16 = scalar_lea.hbm %s1424_s9, 2048  ;;  %s1171_s19 = scalar_lea.hbm %s1481_s7, 4096 }
 0x2cc   : > { %p1168_p4 = scmp.ne.s32.totalorder %s1424_s9, %s1167_s16  ;;  %p1172_p9 = scmp.lt.u32.totalorder %s1424_s9, %s1481_s7 }
 0x2cd   : > { %p1173_p10 = scmp.lt.u32.totalorder %s1171_s19, %s1167_s16  ;;  %p1175_p12 = scmp.lt.u32.totalorder %s1167_s16, %s1424_s9 }
 0x2ce   : > { %p1169_p7 = pnand %p1168_p4, %p1298_p5 }
 0x2cf   : > { %p1174_p11 = por %p1173_p10, %p1172_p9 }
 0x2d0   : > { %p1170_p8 = pneg %p1169_p7 }
 0x2d1   : > { %p1176_p13 = por %p1175_p12, %p1174_p11 }
 0x2d3   : > { %p1177_p0 = pnand %p1176_p13, %p1170_p8 }
 0x2d5   : > { %1180 = shalt.err (!%p1177_p0)
}
 0x2d6   : > { %s1218_s23 = smov 128   ;;  %s1219_s29 = smov 8  }
 0x2d7   : > { %1094 = dma.vmem_to_hbm [thread:$0]  (%p1298_p5), %s1426_s22, 2048, %s1424_s9, %s1433_s28, %s1218_s23, %s1218_s23, %s1219_s29  }
 0x2d8 PF: > { %p1100_p1 = scmp.ge.s32.totalorder %s1215_s27, 2  ;;  %s879_s8 = sand.u32 1, %s1203_s24  }
 0x2d9   : > { %s880_s13 = scalar_lea.sflag [#allocation3], %s879_s8 }
 0x2da   : > { %p1097_p2 = pnand %p1100_p1, %p1302_p6 }
 0x2dc   : > { %1198 = dma.done.wait (!%p1097_p2), %s880_s13, 2048  }
 0x2dd   : > { %1200 = vsyncadd (!%p1097_p2), %s880_s13, 4294965248  ;;  %p17_p3 = scmp.ge.s32.totalorder %s1285_s30, 4   ;;  %s1484_s24 = smov %s1207_s25 }
 0x2de   : > { %s1485_s25 = smov %s1211_s26  ;;  %s1486_s26 = smov %s1296_s10 }
 0x2df   : > { %s1487_s27 = smov %s1285_s30  ;;  %19 = sbr.rel (!%p17_p3) target bundleno = 3 (0x3), region = 83 }
 0x2e6   :  { %885 = vsyncpa [#allocation3], 1 }
 0x2e7   :  { %887 = vsyncpa [#allocation3 + $0x1], 1 }

</bundles_post_ra>
